<compile_context>
chip_gen: v6e
topology: v6e:2x2x1
jax: 0.10.0
libtpu: 0.0.40
codegen_flags: <defaults>
</compile_context>

<pallas_src>
import jax
import jax.numpy as jnp
from jax import lax
from jax.experimental import pallas as pl
from jax.experimental.pallas import tpu as pltpu

MARGIN = 2.0
PAIRWISE_EPS = 1e-6  # F.pairwise_distance default eps


def _round_up(x, m):
    return ((x + m - 1) // m) * m


def _vmem_budget():
    """(input-tile budget, vmem_limit_bytes) per TPU generation."""
    try:
        kind = jax.devices()[0].device_kind.lower()
    except Exception:
        kind = ""
    if any(t in kind for t in ("v4", "v5", "v6")):
        # 128 MiB physical VMEM: tile aggressively (>=512 rows where possible).
        return 48 * 1024 * 1024, 96 * 1024 * 1024
    # v7x (64 MiB VMEM) and unknown parts: conservative.
    return 20 * 1024 * 1024, 48 * 1024 * 1024


def _make_kernel(*, tb, tiles_per_core, true_b, need_mask, lane_dense, margin):
    def kernel(o1_ref, o2_ref, lbl_ref, out_ref):
        i = pl.program_id(1)  # tile index within this core's slice ("arbitrary")

        @pl.when(i == 0)
        def _init():
            out_ref[...] = jnp.zeros_like(out_ref)

        # Hot path: pure HBM streaming + elementwise VPU work.
        o1 = o1_ref[...].astype(jnp.float32)
        o2 = o2_ref[...].astype(jnp.float32)
        diff = o1 - o2 + PAIRWISE_EPS
        sq = diff * diff                                    # (TB, D)

        if lane_dense:
            # Row sums over D on the MXU -> squared distances directly in a
            # lane-dense (1, TB) layout (no lane-sparse (TB,1) intermediates).
            ones = jnp.ones((8, sq.shape[1]), jnp.float32)
            d2 = lax.dot_general(
                ones, sq,
                dimension_numbers=(((1,), (1,)), ((), ())),
                preferred_element_type=jnp.float32,
                precision=lax.Precision.HIGHEST,
            )[0:1, :]                                       # (1, TB)
        else:
            d2 = jnp.sum(sq, axis=-1, keepdims=True)        # (TB, 1)

        d = jnp.sqrt(d2)
        hinge = jnp.maximum(margin - d, 0.0)
        lbl = lbl_ref[...].astype(jnp.float32)              # same layout as d2
        per_pair = (1.0 - lbl) * d2 + lbl * (hinge * hinge)

        if need_mask:
            # Only emitted when the batch is ragged: zero padded / OOB rows
            # (jnp.where also kills any NaN/Inf garbage from the partial block)
            # so the mean still divides by the true batch size.
            c = pl.program_id(0)
            row0 = (c * tiles_per_core + i) * tb
            axis = 1 if lane_dense else 0
            rows = row0 + lax.broadcasted_iota(jnp.int32, per_pair.shape, axis)
            per_pair = jnp.where(rows < true_b, per_pair, 0.0)

        out_ref[...] += jnp.sum(per_pair, keepdims=True)

    return kernel


def _contrastive_loss_impl(output1, output2, label, *, margin, tb, num_cores,
                           lane_dense, vmem_limit):
    B, D = output1.shape
    in_itemsize = jnp.dtype(output1.dtype).itemsize

    tiles_per_core = pl.cdiv(B, num_cores * tb)
    n_tiles = num_cores * tiles_per_core
    need_mask = (n_tiles * tb != B)
    max_block = (B - 1) // tb  # last block index that starts in-bounds

    # Tiny label, padded + pre-tiled to match the kernel's per-row layout.
    lbl = label.reshape(-1).astype(jnp.float32)
    pad = n_tiles * tb - B
    if pad:
        lbl = jnp.pad(lbl, (0, pad))
    if lane_dense:
        lbl_tiles = lbl.reshape(n_tiles, 1, tb)
        lbl_spec = pl.BlockSpec((None, 1, tb),
                                lambda c, i: (c * tiles_per_core + i, 0, 0))
    else:
        lbl_tiles = lbl.reshape(n_tiles, tb, 1)
        lbl_spec = pl.BlockSpec((None, tb, 1),
                                lambda c, i: (c * tiles_per_core + i, 0, 0))

    def io_map(c, i):
        # Clamp so every input DMA is at least partially in bounds; rows past
        # the true batch are masked in-kernel.
        return (jnp.minimum(c * tiles_per_core + i, max_block), 0)

    if num_cores > 1:
        # Intended for v7x (2 TensorCores): shard the leading axis across cores.
        first = getattr(pltpu, "CORE_PARALLEL", "parallel")
        second = getattr(pltpu, "ARBITRARY", "arbitrary")
    else:
        first, second = "arbitrary", "arbitrary"

    kernel = _make_kernel(tb=tb, tiles_per_core=tiles_per_core, true_b=B,
                          need_mask=need_mask, lane_dense=lane_dense,
                          margin=float(margin))

    partials = pl.pallas_call(
        kernel,
        out_shape=jax.ShapeDtypeStruct((num_cores, 1, 1), jnp.float32),
        grid=(num_cores, tiles_per_core),
        in_specs=[
            pl.BlockSpec((tb, D), io_map),
            pl.BlockSpec((tb, D), io_map),
            lbl_spec,
        ],
        out_specs=pl.BlockSpec((None, 1, 1), lambda c, i: (c, 0, 0)),
        compiler_params=pltpu.CompilerParams(
            dimension_semantics=(first, second),
            vmem_limit_bytes=vmem_limit,
        ),
        cost_estimate=pl.CostEstimate(
            flops=5 * B * D + 12 * B,
            transcendentals=B,  # one sqrt per pair
            bytes_accessed=2 * B * D * in_itemsize + 4 * B + 4 * num_cores,
        ),
    )(output1, output2, lbl_tiles)

    # Finish the mean over the TRUE batch size in the wrapper.
    # (f32 partial sums are ample at these scales; a compensated sum could be
    # added for extremely large B.)
    return jnp.sum(partials) / B


# ----------------------------------------------------------------------------
# One-time runtime probe for the lane-dense (MXU row-reduce) tail: verifies it
# both lowers and keeps full f32 accuracy on this jax/libtpu build; otherwise
# the kernel falls back to the simple (TB, 1) tail.
# ----------------------------------------------------------------------------
_DENSE_TAIL_OK = None


def _dense_tail_supported():
    global _DENSE_TAIL_OK
    if _DENSE_TAIL_OK is None:
        try:
            k1, k2, k3 = jax.random.split(jax.random.PRNGKey(123), 3)
            b, d = 128, 256
            o1 = jax.random.normal(k1, (b, d), dtype=jnp.float32)
            o2 = jax.random.normal(k2, (b, d), dtype=jnp.float32)
            lb = jax.random.bernoulli(k3, 0.5, (b, 1)).astype(jnp.float32)
            got = _contrastive_loss_impl(o1, o2, lb, margin=MARGIN, tb=64,
                                         num_cores=1, lane_dense=True,
                                         vmem_limit=32 * 1024 * 1024)
            ref = contrastive_loss_ref(o1, o2, lb)
            _DENSE_TAIL_OK = bool(jnp.allclose(got, ref, rtol=5e-5, atol=5e-5))
        except Exception:
            _DENSE_TAIL_OK = False
    return _DENSE_TAIL_OK


def contrastive_loss(output1, output2, label, *, margin=MARGIN, block_rows=1024,
                     num_cores=1, lane_dense=None):
    assert output1.ndim == 2 and output2.shape == output1.shape
    B, D = output1.shape
    assert label.size == B

    in_itemsize = jnp.dtype(output1.dtype).itemsize
    sub = {4: 8, 2: 16, 1: 32}.get(in_itemsize, 8)  # dtype min sublane tile

    budget, vmem_limit = _vmem_budget()
    # Per-row VMEM: 2 inputs x 2 pipeline buffers (input dtype) + ~4 f32 temps.
    bytes_per_row = D * (2 * 2 * in_itemsize + 4 * 4)
    cap = max(sub, budget // bytes_per_row)
    tb = min(block_rows, cap, _round_up(pl.cdiv(B, num_cores), sub))
    tb = max(sub, (tb // sub) * sub)

    if lane_dense is None:
        lane_dense = _dense_tail_supported()

    return _contrastive_loss_impl(output1, output2, label, margin=margin, tb=tb,
                                  num_cores=num_cores, lane_dense=lane_dense,
                                  vmem_limit=vmem_limit)


def contrastive_loss_ref(output1, output2, label, margin=MARGIN):
    diff = output1.astype(jnp.float32) - output2.astype(jnp.float32) + PAIRWISE_EPS
    d = jnp.sqrt(jnp.sum(diff * diff, axis=-1, keepdims=True))
    lbl = label.reshape(-1, 1).astype(jnp.float32)
    loss = (1.0 - lbl) * d**2 + lbl * jnp.clip(margin - d, 0.0) ** 2
    return jnp.mean(loss)


if __name__ == "__main__":
    key = jax.random.PRNGKey(0)

    # Case 1: small embedding-pair batch (module-consistent shapes).
    k1, k2, k3, k4 = jax.random.split(key, 4)
    B, D = 8, 32
    o1 = jax.random.normal(k1, (B, D), dtype=jnp.float32)
    o2 = jax.random.normal(k2, (B, D), dtype=jnp.float32)
    lbl = jax.random.bernoulli(k3, 0.5, (B, 1)).astype(jnp.float32)

    loss = jax.block_until_ready(contrastive_loss(o1, o2, lbl))
    ref = jax.block_until_ready(contrastive_loss_ref(o1, o2, lbl))
    assert jnp.allclose(loss, ref, rtol=1e-4, atol=1e-4), (loss, ref)

    # Case 2: ragged batch, small tiles -> multi-tile accumulation + partial
    # (OOB) last block masked in-kernel, no wrapper-side padding of the inputs.
    k5, k6, k7, k8 = jax.random.split(k4, 4)
    B2, D2 = 70, 48
    o1b = jax.random.normal(k5, (B2, D2), dtype=jnp.float32)
    o2b = jax.random.normal(k6, (B2, D2), dtype=jnp.float32)
    lblb = jax.random.bernoulli(k7, 0.5, (B2, 1)).astype(jnp.float32)

    loss2 = jax.block_until_ready(contrastive_loss(o1b, o2b, lblb, block_rows=16))
    ref2 = jax.block_until_ready(contrastive_loss_ref(o1b, o2b, lblb))
    assert jnp.allclose(loss2, ref2, rtol=1e-4, atol=1e-4), (loss2, ref2)

    # Case 3: bf16 embeddings at the HBM boundary (upcast in-kernel), TB rounded
    # to the bf16 sublane multiple of 16.
    k9, k10, k11 = jax.random.split(k8, 3)
    B3, D3 = 48, 64
    o1c = jax.random.normal(k9, (B3, D3), dtype=jnp.float32).astype(jnp.bfloat16)
    o2c = jax.random.normal(k10, (B3, D3), dtype=jnp.float32).astype(jnp.bfloat16)
    lblc = jax.random.bernoulli(k11, 0.5, (B3, 1)).astype(jnp.float32)

    loss3 = jax.block_until_ready(contrastive_loss(o1c, o2c, lblc))
    ref3 = jax.block_until_ready(contrastive_loss_ref(o1c, o2c, lblc))
    assert jnp.allclose(loss3, ref3, rtol=1e-4, atol=1e-4), (loss3, ref3)

    print("KERNEL_OK")
</pallas_src>

<mosaic_0001>
module attributes {stable_mosaic.version = 11 : i64} {
  func.func @kernel(%arg0: i32, %arg1: i32, %arg2: memref<64x256xf32, #tpu.memory_space<vmem>>, %arg3: memref<64x256xf32, #tpu.memory_space<vmem>>, %arg4: memref<1x1x64xf32, #tpu.memory_space<vmem>>, %arg5: memref<1x1x1xf32, #tpu.memory_space<vmem>>) attributes {dimension_semantics = [#tpu.dimension_semantics<arbitrary>, #tpu.dimension_semantics<arbitrary>], iteration_bounds = array<i64: 1, 2>, scalar_prefetch = 0 : i64, scratch_operands = 0 : i64, tpu.core_type = #tpu.core_type<tc>, window_params = [{transform_indices = @transform_0, window_bounds = array<i64: 64, 256>}, {transform_indices = @transform_1, window_bounds = array<i64: 64, 256>}, {transform_indices = @transform_2, window_bounds = array<i64: 1, 1, 64>}, {transform_indices = @transform_3, window_bounds = array<i64: 1, 1, 1>}]} {
    %c0_i32 = arith.constant 0 : i32
    %0 = arith.cmpi eq, %arg1, %c0_i32 : i32
    %1 = arith.extui %0 : i1 to i32
    %c0_i32_0 = arith.constant 0 : i32
    %2 = arith.cmpi ne, %1, %c0_i32_0 : i32
    scf.if %2 {
      %cst_19 = arith.constant 0.000000e+00 : f32
      %36 = vector.broadcast %cst_19 : f32 to vector<1x1xf32>
      %c0_20 = arith.constant 0 : index
      %c0_21 = arith.constant 0 : index
      %c0_22 = arith.constant 0 : index
      %37 = vector.load %arg5[%c0_20, %c0_21, %c0_22] : memref<1x1x1xf32, #tpu.memory_space<vmem>>, vector<1x1x1xf32>
      %38 = vector.shape_cast %37 : vector<1x1x1xf32> to vector<1x1xf32>
      %39 = vector.shape_cast %36 : vector<1x1xf32> to vector<1x1x1xf32>
      tpu.vector_store %arg5[%c0_20, %c0_21, %c0_22], %39 {strides = array<i32>} : memref<1x1x1xf32, #tpu.memory_space<vmem>>, vector<1x1x1xf32>,
    } else {
    }
    %c0 = arith.constant 0 : index
    %c0_1 = arith.constant 0 : index
    %3 = vector.load %arg2[%c0, %c0_1] : memref<64x256xf32, #tpu.memory_space<vmem>>, vector<64x256xf32>
    %c0_2 = arith.constant 0 : index
    %c0_3 = arith.constant 0 : index
    %4 = vector.load %arg3[%c0_2, %c0_3] : memref<64x256xf32, #tpu.memory_space<vmem>>, vector<64x256xf32>
    %5 = arith.subf %3, %4 : vector<64x256xf32>
    %cst = arith.constant 9.99999997E-7 : f32
    %6 = vector.broadcast %cst : f32 to vector<64x256xf32>
    %7 = arith.addf %5, %6 : vector<64x256xf32>
    %8 = arith.mulf %7, %7 : vector<64x256xf32>
    %cst_4 = arith.constant 1.000000e+00 : f32
    %9 = vector.broadcast %cst_4 : f32 to vector<8x256xf32>
    %cst_5 = arith.constant dense<0.000000e+00> : vector<8x64xf32>
    %10 = tpu.matmul %9, %8, %cst_5 {dimension_numbers = #tpu.dot_dimension_numbers<[1], [1], [0], [0], [0, 0, 1, 0], [], []>, precision = #tpu.contract_precision<fp32>} : vector<8x256xf32>, vector<64x256xf32>, vector<8x64xf32> -> vector<8x64xf32>
    %11 = vector.extract_strided_slice %10 {offsets = [0, 0], sizes = [1, 64], strides = [1, 1]} : vector<8x64xf32> to vector<1x64xf32>
    %12 = math.sqrt %11 : vector<1x64xf32>
    %cst_6 = arith.constant 2.000000e+00 : f32
    %13 = vector.broadcast %cst_6 : f32 to vector<1x64xf32>
    %14 = arith.subf %13, %12 : vector<1x64xf32>
    %cst_7 = arith.constant 0.000000e+00 : f32
    %15 = vector.broadcast %cst_7 : f32 to vector<1x64xf32>
    %16 = arith.maximumf %14, %15 : vector<1x64xf32>
    %c0_8 = arith.constant 0 : index
    %c0_9 = arith.constant 0 : index
    %c0_10 = arith.constant 0 : index
    %17 = vector.load %arg4[%c0_8, %c0_9, %c0_10] : memref<1x1x64xf32, #tpu.memory_space<vmem>>, vector<1x1x64xf32>
    %18 = vector.shape_cast %17 : vector<1x1x64xf32> to vector<1x64xf32>
    %cst_11 = arith.constant 1.000000e+00 : f32
    %19 = vector.broadcast %cst_11 : f32 to vector<1x64xf32>
    %20 = arith.subf %19, %18 : vector<1x64xf32>
    %21 = arith.mulf %20, %11 : vector<1x64xf32>
    %22 = arith.mulf %16, %16 : vector<1x64xf32>
    %23 = arith.mulf %18, %22 : vector<1x64xf32>
    %24 = arith.addf %21, %23 : vector<1x64xf32>
    %c0_12 = arith.constant 0 : index
    %c0_13 = arith.constant 0 : index
    %c0_14 = arith.constant 0 : index
    %25 = vector.load %arg5[%c0_12, %c0_13, %c0_14] : memref<1x1x1xf32, #tpu.memory_space<vmem>>, vector<1x1x1xf32>
    %26 = vector.shape_cast %25 : vector<1x1x1xf32> to vector<1x1xf32>
    %27 = vector.shape_cast %24 : vector<1x64xf32> to vector<1x1x64xf32>
    %cst_15 = arith.constant dense<0.000000e+00> : vector<1xf32>
    %28 = vector.multi_reduction <add>, %27, %cst_15 [1, 2] : vector<1x1x64xf32> to vector<1xf32>
    %29 = vector.shape_cast %28 : vector<1xf32> to vector<1x1x1xf32>
    %30 = vector.extract %29[0, 0, 0] : f32 from vector<1x1x1xf32>
    %31 = vector.broadcast %30 : f32 to vector<1x1xf32>
    %32 = arith.addf %26, %31 : vector<1x1xf32>
    %c0_16 = arith.constant 0 : index
    %c0_17 = arith.constant 0 : index
    %c0_18 = arith.constant 0 : index
    %33 = vector.load %arg5[%c0_16, %c0_17, %c0_18] : memref<1x1x1xf32, #tpu.memory_space<vmem>>, vector<1x1x1xf32>
    %34 = vector.shape_cast %33 : vector<1x1x1xf32> to vector<1x1xf32>
    %35 = vector.shape_cast %32 : vector<1x1xf32> to vector<1x1x1xf32>
    tpu.vector_store %arg5[%c0_16, %c0_17, %c0_18], %35 {strides = array<i32>} : memref<1x1x1xf32, #tpu.memory_space<vmem>>, vector<1x1x1xf32>,
    return
  }
  func.func @transform_0(%arg0: i32, %arg1: i32) -> (i32, i32) {
    %c2_i32 = arith.constant 2 : i32
    %0 = arith.muli %arg0, %c2_i32 : i32
    %1 = arith.addi %0, %arg1 : i32
    %c1_i32 = arith.constant 1 : i32
    %2 = arith.minsi %1, %c1_i32 : i32
    %c0_i32 = arith.constant 0 : i32
    %c0_i32_0 = arith.constant 0 : i32
    return %2, %c0_i32 : i32, i32
  }
  func.func @transform_1(%arg0: i32, %arg1: i32) -> (i32, i32) {
    %c2_i32 = arith.constant 2 : i32
    %0 = arith.muli %arg0, %c2_i32 : i32
    %1 = arith.addi %0, %arg1 : i32
    %c1_i32 = arith.constant 1 : i32
    %2 = arith.minsi %1, %c1_i32 : i32
    %c0_i32 = arith.constant 0 : i32
    %c0_i32_0 = arith.constant 0 : i32
    return %2, %c0_i32 : i32, i32
  }
  func.func @transform_2(%arg0: i32, %arg1: i32) -> (i32, i32, i32) {
    %c2_i32 = arith.constant 2 : i32
    %0 = arith.muli %arg0, %c2_i32 : i32
    %1 = arith.addi %0, %arg1 : i32
    %c0_i32 = arith.constant 0 : i32
    %c0_i32_0 = arith.constant 0 : i32
    %c0_i32_1 = arith.constant 0 : i32
    return %1, %c0_i32, %c0_i32_0 : i32, i32, i32
  }
  func.func @transform_3(%arg0: i32, %arg1: i32) -> (i32, i32, i32) {
    %c0_i32 = arith.constant 0 : i32
    %c0_i32_0 = arith.constant 0 : i32
    %c0_i32_1 = arith.constant 0 : i32
    return %arg0, %c0_i32, %c0_i32_0 : i32, i32, i32
  }
}

module attributes {stable_mosaic.version = 11 : i64} {
  func.func @kernel(%arg0: i32, %arg1: i32, %arg2: memref<8x32xf32, #tpu.memory_space<vmem>>, %arg3: memref<8x32xf32, #tpu.memory_space<vmem>>, %arg4: memref<1x8x1xf32, #tpu.memory_space<vmem>>, %arg5: memref<1x1x1xf32, #tpu.memory_space<vmem>>) attributes {dimension_semantics = [#tpu.dimension_semantics<arbitrary>, #tpu.dimension_semantics<arbitrary>], iteration_bounds = array<i64: 1, 1>, scalar_prefetch = 0 : i64, scratch_operands = 0 : i64, tpu.core_type = #tpu.core_type<tc>, window_params = [{transform_indices = @transform_0, window_bounds = array<i64: 8, 32>}, {transform_indices = @transform_1, window_bounds = array<i64: 8, 32>}, {transform_indices = @transform_2, window_bounds = array<i64: 1, 8, 1>}, {transform_indices = @transform_3, window_bounds = array<i64: 1, 1, 1>}]} {
    %c0_i32 = arith.constant 0 : i32
    %0 = arith.cmpi eq, %arg1, %c0_i32 : i32
    %1 = arith.extui %0 : i1 to i32
    %c0_i32_0 = arith.constant 0 : i32
    %2 = arith.cmpi ne, %1, %c0_i32_0 : i32
    scf.if %2 {
      %cst_18 = arith.constant 0.000000e+00 : f32
      %35 = vector.broadcast %cst_18 : f32 to vector<1x1xf32>
      %c0_19 = arith.constant 0 : index
      %c0_20 = arith.constant 0 : index
      %c0_21 = arith.constant 0 : index
      %36 = vector.load %arg5[%c0_19, %c0_20, %c0_21] : memref<1x1x1xf32, #tpu.memory_space<vmem>>, vector<1x1x1xf32>
      %37 = vector.shape_cast %36 : vector<1x1x1xf32> to vector<1x1xf32>
      %38 = vector.shape_cast %35 : vector<1x1xf32> to vector<1x1x1xf32>
      tpu.vector_store %arg5[%c0_19, %c0_20, %c0_21], %38 {strides = array<i32>} : memref<1x1x1xf32, #tpu.memory_space<vmem>>, vector<1x1x1xf32>,
    } else {
    }
    %c0 = arith.constant 0 : index
    %c0_1 = arith.constant 0 : index
    %3 = vector.load %arg2[%c0, %c0_1] : memref<8x32xf32, #tpu.memory_space<vmem>>, vector<8x32xf32>
    %c0_2 = arith.constant 0 : index
    %c0_3 = arith.constant 0 : index
    %4 = vector.load %arg3[%c0_2, %c0_3] : memref<8x32xf32, #tpu.memory_space<vmem>>, vector<8x32xf32>
    %5 = arith.subf %3, %4 : vector<8x32xf32>
    %cst = arith.constant 9.99999997E-7 : f32
    %6 = vector.broadcast %cst : f32 to vector<8x32xf32>
    %7 = arith.addf %5, %6 : vector<8x32xf32>
    %8 = arith.mulf %7, %7 : vector<8x32xf32>
    %cst_4 = arith.constant dense<0.000000e+00> : vector<8xf32>
    %9 = vector.multi_reduction <add>, %8, %cst_4 [1] : vector<8x32xf32> to vector<8xf32>
    %10 = vector.shape_cast %9 : vector<8xf32> to vector<8x1xf32>
    %11 = math.sqrt %10 : vector<8x1xf32>
    %cst_5 = arith.constant 2.000000e+00 : f32
    %12 = vector.broadcast %cst_5 : f32 to vector<8x1xf32>
    %13 = arith.subf %12, %11 : vector<8x1xf32>
    %cst_6 = arith.constant 0.000000e+00 : f32
    %14 = vector.broadcast %cst_6 : f32 to vector<8x1xf32>
    %15 = arith.maximumf %13, %14 : vector<8x1xf32>
    %c0_7 = arith.constant 0 : index
    %c0_8 = arith.constant 0 : index
    %c0_9 = arith.constant 0 : index
    %16 = vector.load %arg4[%c0_7, %c0_8, %c0_9] : memref<1x8x1xf32, #tpu.memory_space<vmem>>, vector<1x8x1xf32>
    %17 = vector.shape_cast %16 : vector<1x8x1xf32> to vector<8x1xf32>
    %cst_10 = arith.constant 1.000000e+00 : f32
    %18 = vector.broadcast %cst_10 : f32 to vector<8x1xf32>
    %19 = arith.subf %18, %17 : vector<8x1xf32>
    %20 = arith.mulf %19, %10 : vector<8x1xf32>
    %21 = arith.mulf %15, %15 : vector<8x1xf32>
    %22 = arith.mulf %17, %21 : vector<8x1xf32>
    %23 = arith.addf %20, %22 : vector<8x1xf32>
    %c0_11 = arith.constant 0 : index
    %c0_12 = arith.constant 0 : index
    %c0_13 = arith.constant 0 : index
    %24 = vector.load %arg5[%c0_11, %c0_12, %c0_13] : memref<1x1x1xf32, #tpu.memory_space<vmem>>, vector<1x1x1xf32>
    %25 = vector.shape_cast %24 : vector<1x1x1xf32> to vector<1x1xf32>
    %26 = vector.shape_cast %23 : vector<8x1xf32> to vector<1x8x1xf32>
    %cst_14 = arith.constant dense<0.000000e+00> : vector<1xf32>
    %27 = vector.multi_reduction <add>, %26, %cst_14 [1, 2] : vector<1x8x1xf32> to vector<1xf32>
    %28 = vector.shape_cast %27 : vector<1xf32> to vector<1x1x1xf32>
    %29 = vector.extract %28[0, 0, 0] : f32 from vector<1x1x1xf32>
    %30 = vector.broadcast %29 : f32 to vector<1x1xf32>
    %31 = arith.addf %25, %30 : vector<1x1xf32>
    %c0_15 = arith.constant 0 : index
    %c0_16 = arith.constant 0 : index
    %c0_17 = arith.constant 0 : index
    %32 = vector.load %arg5[%c0_15, %c0_16, %c0_17] : memref<1x1x1xf32, #tpu.memory_space<vmem>>, vector<1x1x1xf32>
    %33 = vector.shape_cast %32 : vector<1x1x1xf32> to vector<1x1xf32>
    %34 = vector.shape_cast %31 : vector<1x1xf32> to vector<1x1x1xf32>
    tpu.vector_store %arg5[%c0_15, %c0_16, %c0_17], %34 {strides = array<i32>} : memref<1x1x1xf32, #tpu.memory_space<vmem>>, vector<1x1x1xf32>,
    return
  }
  func.func @transform_0(%arg0: i32, %arg1: i32) -> (i32, i32) {
    %c1_i32 = arith.constant 1 : i32
    %0 = arith.muli %arg0, %c1_i32 : i32
    %1 = arith.addi %0, %arg1 : i32
    %c0_i32 = arith.constant 0 : i32
    %2 = arith.minsi %1, %c0_i32 : i32
    %c0_i32_0 = arith.constant 0 : i32
    %c0_i32_1 = arith.constant 0 : i32
    return %2, %c0_i32_0 : i32, i32
  }
  func.func @transform_1(%arg0: i32, %arg1: i32) -> (i32, i32) {
    %c1_i32 = arith.constant 1 : i32
    %0 = arith.muli %arg0, %c1_i32 : i32
    %1 = arith.addi %0, %arg1 : i32
    %c0_i32 = arith.constant 0 : i32
    %2 = arith.minsi %1, %c0_i32 : i32
    %c0_i32_0 = arith.constant 0 : i32
    %c0_i32_1 = arith.constant 0 : i32
    return %2, %c0_i32_0 : i32, i32
  }
  func.func @transform_2(%arg0: i32, %arg1: i32) -> (i32, i32, i32) {
    %c1_i32 = arith.constant 1 : i32
    %0 = arith.muli %arg0, %c1_i32 : i32
    %1 = arith.addi %0, %arg1 : i32
    %c0_i32 = arith.constant 0 : i32
    %c0_i32_0 = arith.constant 0 : i32
    %c0_i32_1 = arith.constant 0 : i32
    return %1, %c0_i32, %c0_i32_0 : i32, i32, i32
  }
  func.func @transform_3(%arg0: i32, %arg1: i32) -> (i32, i32, i32) {
    %c0_i32 = arith.constant 0 : i32
    %c0_i32_0 = arith.constant 0 : i32
    %c0_i32_1 = arith.constant 0 : i32
    return %arg0, %c0_i32, %c0_i32_0 : i32, i32, i32
  }
}

</mosaic_0001>

<bundles_post_ra>
// kernel: tpu_custom_call.1
= control target key start
LH: loop header
LB: loop body
LE: loop exit
PB: predicated region body
PF: predicated region fallthrough
CT: control target
= control target key end

     0   :  { %8 = vsyncpa [#allocation3], 0  ;;  %s1853_s0 = inlined_call_operand.hbm [shape: f32[128,256], index: 0, kind: input, shape index: {}]   ;;  %s1854_s1 = inlined_call_operand.hbm [shape: f32[128,256], index: 1, kind: input, shape index: {}]   ;;  %s1855_s2 = inlined_call_operand.vmem [shape: f32[2,1,64], index: 2, kind: input, shape index: {}]   ;;  %s1856_s3 = inlined_call_operand.hbm [shape: f32[1,1,1], index: 3, kind: output, shape index: {}]  }
   0x1   :  { %10 = vsyncpa [#allocation3 + $0x1], 0 }
   0x2   :  { %11 = vsyncpa [#allocation6], 0 }
   0x3   :  { %13 = vsyncpa [#allocation6 + $0x1], 0 }
   0x4   :  { %14 = vsyncpa [#allocation4], 0  ;;  %s1412_s12 = smov 0   ;;  %s1414_s13 = smov 0  }
   0x5   :  { %s1416_s14 = smov 0   ;;  %s1418_s15 = smov 0  }
   0x6   :  { %s1420_s16 = smov 0   ;;  %s1422_s17 = smov 0  }
   0x7 LB: > { %s1145_s18 = sadd.s32 4294967295, %s1382_s17   ;;  %s29_s19 = sadd.s32 1, %s1378_s16  ;;  %s1382_s17 = sphi %s1422_s17, %s20_s17   ;;  %s1378_s16 = sphi %s1420_s16, %s1865_s16   ;;  %s1374_s15 = sphi %s1418_s15, %s1864_s15   ;;  %s1370_s14 = sphi %s1416_s14, %s1863_s14   ;;  %s1366_s13 = sphi %s1414_s13, %s1862_s13   ;;  %s1362_s12 = sphi %s1412_s12, %s1861_s12  }
   0x8   : > { %p30_p0 = scmp.ge.s32.totalorder %s29_s19, 2  ;;  %p38_p1 = scmp.lt.s32.totalorder %s1378_s16, 1 }
   0x9   : > { %s47_s20 = sadd.s32 1, %s1370_s14  ;;  %p54_p2 = scmp.ne.s32.totalorder %s1370_s14, %s1366_s13 }
   0xa   : > { %s1867_s19 = smov (%p30_p0, %s29_s19), 0  ;;  %p55_p4 = scmp.eq.s32.totalorder %s1382_s17, 0 }
   0xb   : > { %s1449_s21 = scalar_select %p38_p1, %s1378_s16, 1 }
   0xc   : > { %p42_p3 = scmp.lt.s32.totalorder %s1867_s19, 1  ;;  %p60_p5 = scmp.ne.s32.totalorder %s1366_s13, %s1362_s12 }
   0xd   : > { %p61_p6 = scmp.eq.s32.totalorder %s1145_s18, 0  ;;  %p56_p7 = por %p55_p4, %p54_p2 }
   0xe   : > { %s43_s22 = scalar_select %p42_p3, %s1867_s19, 1 }
   0xf   : > { %p1457_p8 = por %p61_p6, %p60_p5  ;;  %p1185_p10 = scmp.lt.s32.totalorder %s1382_s17, 2 }
  0x10   : > { %s44_s24 = ssub.s32 %s1449_s21, %s43_s22  ;;  %s1464_s25 = sand.u32 1, %s1370_s14  }
  0x11   : > { %p45_p9 = scmp.eq.s32.totalorder %s44_s24, 0  ;;  %s1165_s26 = sshll.u32 %s1449_s21, 11 }
  0x12   : > { %s1148_s28 = sshll.u32 %s1464_s25, 7  ;;  %s189_s4 = scalar_lea.hbm %s1853_s0, %s1165_s26 }
  0x13   : > { %s1468_s27 = scalar_select %p45_p9, %s1370_s14, %s47_s20  }
  0x14   : > { %s178_s5 = scalar_lea.vmem [#allocation2], %s1148_s28  ;;  %p1476_p11 = pnand %p1185_p10, %p56_p7 }
  0x15   : > { %s190_s6 = sshll.u32 %s178_s5, 4  ;;  %s175_s8 = scalar_lea.sflag [#allocation3], %s1464_s25  ;;  %s191_s6 = int_to_ptr.vmem [resolvable:$true] %s190_s6 }
  0x16   : > { %p1246_p12 = pneg %p1476_p11  ;;  %s1257_s9 = scalar_lea.vmem %s191_s6, 2048 }
  0x17   : > { %p1258_p13 = scmp.ne.s32.totalorder %s191_s6, %s1257_s9  ;;  %s1384_s10 = smov [#allocation2]  }
  0x18   : > { %s1262_s11 = sshll.u32 %s1384_s10, 4  ;;  %s1263_s11 = int_to_ptr.vmem [resolvable:$false] %s1262_s11 }
  0x19   : > { %p1260_p0 = pnand %p1258_p13, %p1246_p12  ;;  %s1264_s12 = scalar_lea.vmem %s1263_s11, 4096 }
  0x1a   : > { %p1265_p2 = scmp.lt.s32.totalorder %s191_s6, %s1263_s11  ;;  %p1266_p3 = scmp.lt.s32.totalorder %s1264_s12, %s1257_s9 }
  0x1b   : > { %p1261_p1 = pneg %p1260_p0 }
  0x1c   : > { %p1267_p4 = por %p1266_p3, %p1265_p2 }
  0x1e   : > { %p1268_p5 = pnand %p1267_p4, %p1261_p1 }
  0x20   : > { %1271 = shalt.err (!%p1268_p5)
}
  0x21   : > { %s1385_s20 = smov 256   ;;  %s1386_s22 = smov 16  }
  0x22   : > { %1181 = dma.hbm_to_vmem [thread:$0]  (!%p1476_p11), %s189_s4, 2048, %s191_s6, %s175_s8, %s1385_s20, %s1385_s20, %s1386_s22  }
  0x23   : > { %p1156_p6 = scmp.ge.s32.totalorder %s1382_s17, 1  ;;  %p234_p7 = scmp.lt.s32.totalorder %s1382_s17, 3 }
  0x24   : > { %s215_s5 = scalar_lea.hbm %s1854_s1, %s1165_s26  ;;  %s204_s9 = scalar_lea.vmem [#allocation5], %s1148_s28 }
  0x25   : > { %p1490_p9 = pnand %p1156_p6, %p234_p7  ;;  %s216_s10 = sshll.u32 %s204_s9, 4  ;;  %s217_s10 = int_to_ptr.vmem [resolvable:$true] %s216_s10 }
  0x26   : > { %s201_s11 = scalar_lea.sflag [#allocation6], %s1464_s25  ;;  %s1285_s12 = scalar_lea.vmem %s217_s10, 2048 }
  0x27   : > { %p1286_p10 = scmp.ne.s32.totalorder %s217_s10, %s1285_s12  ;;  %s1387_s4 = smov [#allocation5]  }
  0x28   : > { %s1290_s6 = sshll.u32 %s1387_s4, 4  ;;  %s1291_s6 = int_to_ptr.vmem [resolvable:$false] %s1290_s6 }
  0x29   : > { %p1288_p13 = pnand %p1286_p10, %p1246_p12  ;;  %s1292_s8 = scalar_lea.vmem %s1291_s6, 4096 }
  0x2a   : > { %p1293_p1 = scmp.lt.s32.totalorder %s217_s10, %s1291_s6  ;;  %p1294_p2 = scmp.lt.s32.totalorder %s1292_s8, %s1285_s12 }
  0x2b   : > { %p1289_p0 = pneg %p1288_p13 }
  0x2c   : > { %p1295_p3 = por %p1294_p2, %p1293_p1 }
  0x2e   : > { %p1296_p4 = pnand %p1295_p3, %p1289_p0 }
  0x30   : > { %1299 = shalt.err (!%p1296_p4)
}
  0x31   : > { %1184 = dma.hbm_to_vmem [thread:$0]  (!%p1476_p11), %s215_s5, 2048, %s217_s10, %s201_s11, %s1385_s20, %s1385_s20, %s1386_s22  }
  0x32   : > { %238 = sbr.rel (%p1490_p9) target bundleno = 614 (0x266), region = 32  ;;  %s240_s21 = sand.u32 (!%p1490_p9), 1, %s1366_s13  }
  0x33   : > { %s1157_s25 = sshll.u32 (!%p1490_p9), %s240_s21, 7  ;;  %s241_s26 = scalar_lea.sflag (!%p1490_p9), [#allocation3], %s240_s21 }
  0x34   : > { %s1508_s28 = scalar_lea.vmem (!%p1490_p9), [#allocation2], %s1157_s25 }
  0x37   : > { %1349 = dma.done.wait (%p1457_p8), %s241_s26, 2048  }
  0x38   : > { %1351 = vsyncadd (%p1457_p8), %s241_s26, 4294965248  ;;  %s250_s29 = scalar_lea.sflag [#allocation6], %s240_s21  ;;  %s1514_s30 = scalar_lea.vmem [#allocation5], %s1157_s25 }
  0x39   : > { %1353 = dma.done.wait (%p1457_p8), %s250_s29, 2048  }
  0x3a   : > { %1355 = vsyncadd (%p1457_p8), %s250_s29, 4294965248  ;;  %p293_p11 = scmp.lt.s32.totalorder %s1374_s15, 1  ;;  %p1159_p12 = scmp.ne.s32.totalorder %s1374_s15, 0 }
  0x3c   : > { %s1522_s7 = scalar_select %p293_p11, %s1374_s15, 1 }
  0x3d   : > { %301 = sbr.rel (%p1159_p12) target bundleno = 68 (0x44), region = 44 }
  0x3e   : > { %s295_s24 = scalar_lea.vmem %s1855_s2, %s1522_s7 }
  0x42   : > { %vm302_vm0 = vcmask 0   ;;  %v1388_v0 = vmov 0.0  }
  0x43   : > { %303 = vst.msk [vmem:[#allocation7] sm:$0x1] %vm302_vm0, %v1388_v0 }
  0x44 PF: > { %v319_v1 = vld [vmem:[%s1508_s28 + $0x78] sm:$0xff]  ;;  %v318_v3 = vld [vmem:[%s1508_s28 + $0x70] sm:$0xff]  ;;  %v317_v6 = vld [vmem:[%s1508_s28 + $0x68] sm:$0xff]  ;;  %v1389_v8 = vmov 0.0   ;;  %v1390_v9 = vmov 1.0   ;;  %vm1028_vm3 = vcmask 516096  }
  0x45   : > { %v335_v2 = vld [vmem:[%s1514_s30 + $0x78] sm:$0xff]  ;;  %v334_v5 = vld [vmem:[%s1514_s30 + $0x70] sm:$0xff]  ;;  %v333_v7 = vld [vmem:[%s1514_s30 + $0x68] sm:$0xff]  ;;  %464 = vmatprep.mubr.f32.mxu0 %v1389_v8  ;;  %614 = vmatprep.mubr.f32.mxu1 %v1390_v9  ;;  %s1391_s5 = smov [#allocation7]   ;;  %vm1041_vm4 = vcmask 0   ;;  %p1820_p8 = scmp.eq.s32.totalorder %s1145_s18, 1 }
  0x46   : > { %v351_v4 = vsub.f32 %v319_v1, %v335_v2  ;;  %v350_v10 = vsub.f32 %v318_v3, %v334_v5  ;;  %v349_v11 = vsub.f32 %v317_v6, %v333_v7  ;;  %v316_v12 = vld [vmem:[%s1508_s28 + $0x60] sm:$0xff]  ;;  %v315_v14 = vld [vmem:[%s1508_s28 + $0x58] sm:$0xff]  ;;  %v314_v18 = vld [vmem:[%s1508_s28 + $0x50] sm:$0xff]  ;;  %s1052_s9 = sshll.u32 %s1391_s5, 4  ;;  %s1053_s9 = int_to_ptr.vmem [resolvable:$true] %s1052_s9 }
  0x47   : > { %v332_v13 = vld [vmem:[%s1514_s30 + $0x60] sm:$0xff]  ;;  %v331_v17 = vld [vmem:[%s1514_s30 + $0x58] sm:$0xff]  ;;  %v330_v19 = vld [vmem:[%s1514_s30 + $0x50] sm:$0xff]  ;;  %s1300_s12 = scalar_lea.vmem %s1053_s9, 16  ;;  %s1306_s4 = scalar_lea.vmem %s1053_s9, 32 }
  0x48   : > { %v367_v15 = vadd.f32 1e-06, %v351_v4  ;;  %v348_v16 = vsub.f32 %v316_v12, %v332_v13  ;;  %v366_v20 = vadd.f32 1e-06, %v350_v10  ;;  %v365_v21 = vadd.f32 1e-06, %v349_v11  ;;  %p1301_p5 = scmp.ne.s32.totalorder %s1053_s9, %s1300_s12  ;;  %p1307_p9 = scmp.lt.s32.totalorder %s1053_s9, %s1053_s9 }
  0x49   : > { %v347_v22 = vsub.f32 %v315_v14, %v331_v17  ;;  %v346_v23 = vsub.f32 %v314_v18, %v330_v19  ;;  %v313_v24 = vld [vmem:[%s1508_s28 + $0x48] sm:$0xff]  ;;  %v312_v29 = vld [vmem:[%s1508_s28 + $0x40] sm:$0xff]  ;;  %v311_v47 = vld [vmem:[%s1508_s28 + $0x38] sm:$0xff]  ;;  %p1308_p10 = scmp.lt.s32.totalorder %s1306_s4, %s1300_s12 }
  0x4a   : > { %v329_v25 = vld [vmem:[%s1514_s30 + $0x48] sm:$0xff]  ;;  %v383_v26 = vmul.f32 %v367_v15, %v367_v15  ;;  %v364_v27 = vadd.f32 1e-06, %v348_v16  ;;  %v328_v30 = vld [vmem:[%s1514_s30 + $0x40] sm:$0xff]  ;;  %v382_v31 = vmul.f32 %v366_v20, %v366_v20  ;;  %v381_v32 = vmul.f32 %v365_v21, %v365_v21  ;;  %v327_v48 = vld [vmem:[%s1514_s30 + $0x38] sm:$0xff]  ;;  %p1302_p6 = pnand %p1301_p5, %p1820_p8 }
  0x4b   : > { %v345_v28 = vsub.f32 %v313_v24, %v329_v25  ;;  %v363_v33 = vadd.f32 1e-06, %v347_v22  ;;  %v362_v34 = vadd.f32 1e-06, %v346_v23  ;;  %v344_v38 = vsub.f32 %v312_v29, %v328_v30  ;;  %v310_v53 = vld [vmem:[%s1508_s28 + $0x30] sm:$0xff]  ;;  %v309_v7 = vld [vmem:[%s1508_s28 + $0x28] sm:$0xff]  ;;  %p1309_p13 = por %p1308_p10, %p1307_p9 }
  0x4c   : > { %v1547_v35 = vand.u32 4294901760, %v383_v26  ;;  %v380_v36 = vmul.f32 %v364_v27, %v364_v27  ;;  %v1549_v39 = vand.u32 4294901760, %v382_v31  ;;  %v1551_v40 = vand.u32 4294901760, %v381_v32  ;;  %v326_v54 = vld [vmem:[%s1514_s30 + $0x30] sm:$0xff]  ;;  %v325_v10 = vld [vmem:[%s1514_s30 + $0x28] sm:$0xff]  ;;  %v308_v15 = vld [vmem:[%s1508_s28 + $0x20] sm:$0xff]  ;;  %p1303_p7 = pneg %p1302_p6 }
  0x4d   : > { %v361_v37 = vadd.f32 1e-06, %v345_v28  ;;  %v379_v41 = vmul.f32 %v363_v33, %v363_v33  ;;  %v378_v42 = vmul.f32 %v362_v34, %v362_v34  ;;  %v360_v46 = vadd.f32 1e-06, %v344_v38  ;;  %v324_v16 = vld [vmem:[%s1514_s30 + $0x20] sm:$0xff]  ;;  %v307_v25 = vld [vmem:[%s1508_s28 + $0x18] sm:$0xff] }
  0x4e   : > { %401 = vmatprep.subr.mxu0 %v1547_v35  ;;  %v1554_v43 = vand.u32 4294901760, %v380_v36  ;;  %v1557_v44 = vsub.f32 %v383_v26, %v1547_v35  ;;  %v1567_v51 = vsub.f32 %v382_v31, %v1549_v39  ;;  %v1570_v52 = vsub.f32 %v381_v32, %v1551_v40  ;;  %v323_v26 = vld [vmem:[%s1514_s30 + $0x18] sm:$0xff]  ;;  %v306_v31 = vld [vmem:[%s1508_s28 + $0x10] sm:$0xff]  ;;  %p1310_p0 = pnand %p1309_p13, %p1303_p7 }
  0x4f   : > { %v377_v45 = vmul.f32 %v361_v37, %v361_v37  ;;  %403 = vmatpush1.xpose.msra.mxu0 %v1549_v39  ;;  %v1562_v49 = vand.u32 4294901760, %v379_v41  ;;  %v1564_v50 = vand.u32 4294901760, %v378_v42  ;;  %v376_v57 = vmul.f32 %v360_v46, %v360_v46  ;;  %v322_v32 = vld [vmem:[%s1514_s30 + $0x10] sm:$0xff] }
  0x50   : > { %405 = vmatprep.subr.mxu0 %v1551_v40  ;;  %v488_v55 = vand.u32 4294901760, %v1557_v44  ;;  %v1579_v58 = vsub.f32 %v380_v36, %v1554_v43  ;;  %v494_v59 = vand.u32 4294901760, %v1567_v51  ;;  %v500_v60 = vand.u32 4294901760, %v1570_v52 }
  0x51   : > { %v1576_v56 = vand.u32 4294901760, %v377_v45  ;;  %v343_v61 = vsub.f32 %v311_v47, %v327_v48  ;;  %v1584_v62 = vsub.f32 %v379_v41, %v1562_v49  ;;  %v1589_v0 = vand.u32 4294901760, %v376_v57 }
  0x52   : > { %v489_v63 = vsub.f32 %v1557_v44, %v488_v55  ;;  %v506_v1 = vand.u32 4294901760, %v1579_v58  ;;  %v342_v2 = vsub.f32 %v310_v53, %v326_v54  ;;  %v495_v3 = vsub.f32 %v1567_v51, %v494_v59 }
  0x53   : > { %407 = vmatpush1.xpose.msra.mxu0 %v1554_v43  ;;  %v501_v4 = vsub.f32 %v1570_v52, %v500_v60  ;;  %v359_v5 = vadd.f32 1e-06, %v343_v61  ;;  %v512_v6 = vand.u32 4294901760, %v1584_v62  ;;  %v1607_v14 = vsub.f32 %v378_v42, %v1564_v50 }
  0x54   : > { %409 = vmatprep.subr.mxu0 %v1562_v49  ;;  %v490_v11 = vand.u32 4294901760, %v489_v63  ;;  %v507_v12 = vsub.f32 %v1579_v58, %v506_v1  ;;  %v358_v13 = vadd.f32 1e-06, %v342_v2  ;;  %v496_v17 = vand.u32 4294901760, %v495_v3  ;;  %v305_v2 = vld [vmem:[%s1508_s28 + $0x8] sm:$0xff] }
  0x55   : > { %v502_v18 = vand.u32 4294901760, %v501_v4  ;;  %v375_v19 = vmul.f32 %v359_v5, %v359_v5  ;;  %v513_v20 = vsub.f32 %v1584_v62, %v512_v6  ;;  %v518_v23 = vand.u32 4294901760, %v1607_v14  ;;  %v321_v3 = vld [vmem:[%s1514_s30 + $0x8] sm:$0xff] }
  0x56   : > { %491 = vmatprep.subr.mxu1 %v490_v11  ;;  %v508_v21 = vand.u32 4294901760, %v507_v12  ;;  %v374_v22 = vmul.f32 %v358_v13, %v358_v13  ;;  %v341_v24 = vsub.f32 %v309_v7, %v325_v10  ;;  %v1621_v29 = vsub.f32 %v377_v45, %v1576_v56  ;;  %v304_v11 = vld [vmem:[%s1508_s28] sm:$0xff] }
  0x57   : > { %411 = vmatpush1.xpose.msra.mxu0 %v1564_v50  ;;  %497 = vmatpush1.xpose.msra.mxu1 %v496_v17  ;;  %v1618_v27 = vand.u32 4294901760, %v375_v19  ;;  %v514_v28 = vand.u32 4294901760, %v513_v20  ;;  %v340_v30 = vsub.f32 %v308_v15, %v324_v16  ;;  %v519_v34 = vsub.f32 %v1607_v14, %v518_v23  ;;  %v320_v12 = vld [vmem:[%s1514_s30] sm:$0xff] }
  0x58   : > { %413 = vmatprep.subr.mxu0 %v1576_v56  ;;  %503 = vmatprep.subr.mxu1 %v502_v18  ;;  %v1626_v33 = vand.u32 4294901760, %v374_v22  ;;  %v357_v36 = vadd.f32 1e-06, %v341_v24  ;;  %v1632_v37 = vsub.f32 %v376_v57, %v1589_v0  ;;  %v524_v38 = vand.u32 4294901760, %v1621_v29 }
  0x59   : > { %v356_v41 = vadd.f32 1e-06, %v340_v30  ;;  %v339_v42 = vsub.f32 %v307_v25, %v323_v26  ;;  %v1636_v45 = vsub.f32 %v375_v19, %v1618_v27  ;;  %v520_v46 = vand.u32 4294901760, %v519_v34 }
  0x5a   : > { %v373_v47 = vmul.f32 %v357_v36, %v357_v36  ;;  %v530_v48 = vand.u32 4294901760, %v1632_v37  ;;  %v338_v53 = vsub.f32 %v306_v31, %v322_v32  ;;  %v525_v54 = vsub.f32 %v1621_v29, %v524_v38 }
  0x5b   : > { %415 = vmatpush1.xpose.msra.mxu0 %v1589_v0  ;;  %509 = vmatpush1.xpose.msra.mxu1 %v508_v21  ;;  %v372_v57 = vmul.f32 %v356_v41, %v356_v41  ;;  %v355_v61 = vadd.f32 1e-06, %v339_v42  ;;  %v536_v63 = vand.u32 4294901760, %v1636_v45  ;;  %v1653_v10 = vsub.f32 %v374_v22, %v1626_v33 }
  0x5c   : > { %417 = vmatprep.subr.mxu0 %v1618_v27  ;;  %515 = vmatprep.subr.mxu1 %v514_v28  ;;  %v1647_v4 = vand.u32 4294901760, %v373_v47  ;;  %v531_v5 = vsub.f32 %v1632_v37, %v530_v48  ;;  %v354_v7 = vadd.f32 1e-06, %v338_v53  ;;  %v526_v13 = vand.u32 4294901760, %v525_v54 }
  0x5d   : > { %v1657_v15 = vand.u32 4294901760, %v372_v57  ;;  %v371_v16 = vmul.f32 %v355_v61, %v355_v61  ;;  %v537_v17 = vsub.f32 %v1636_v45, %v536_v63  ;;  %v542_v20 = vand.u32 4294901760, %v1653_v10 }
  0x5e   : > { %v532_v18 = vand.u32 4294901760, %v531_v5  ;;  %v370_v19 = vmul.f32 %v354_v7, %v354_v7  ;;  %v337_v21 = vsub.f32 %v305_v2, %v321_v3  ;;  %v1667_v25 = vsub.f32 %v373_v47, %v1647_v4 }
  0x5f   : > { %419 = vmatpush1.xpose.msra.mxu0 %v1626_v33  ;;  %521 = vmatpush1.xpose.msra.mxu1 %v520_v46  ;;  %v1664_v22 = vand.u32 4294901760, %v371_v16  ;;  %v538_v24 = vand.u32 4294901760, %v537_v17  ;;  %v336_v26 = vsub.f32 %v304_v11, %v320_v12  ;;  %v543_v30 = vsub.f32 %v1653_v10, %v542_v20 }
  0x60   : > { %421 = vmatprep.subr.mxu0 %v1647_v4  ;;  %527 = vmatprep.subr.mxu1 %v526_v13  ;;  %v1670_v28 = vand.u32 4294901760, %v370_v19  ;;  %v353_v31 = vadd.f32 1e-06, %v337_v21  ;;  %v1676_v32 = vsub.f32 %v372_v57, %v1657_v15  ;;  %v548_v34 = vand.u32 4294901760, %v1667_v25 }
  0x61   : > { %v352_v36 = vadd.f32 1e-06, %v336_v26  ;;  %v1680_v41 = vsub.f32 %v371_v16, %v1664_v22  ;;  %v544_v53 = vand.u32 4294901760, %v543_v30 }
  0x62   : > { %v369_v42 = vmul.f32 %v353_v31, %v353_v31  ;;  %v554_v46 = vand.u32 4294901760, %v1676_v32  ;;  %v1684_v47 = vsub.f32 %v370_v19, %v1670_v28  ;;  %v549_v54 = vsub.f32 %v1667_v25, %v548_v34 }
  0x63   : > { %423 = vmatpush1.xpose.msra.mxu0 %v1657_v15  ;;  %533 = vmatpush1.xpose.msra.mxu1 %v532_v18  ;;  %v368_v57 = vmul.f32 %v352_v36, %v352_v36  ;;  %v560_v61 = vand.u32 4294901760, %v1680_v41 }
  0x64   : > { %425 = vmatprep.subr.mxu0 %v1664_v22  ;;  %539 = vmatprep.subr.mxu1 %v538_v24  ;;  %v1692_v2 = vand.u32 4294901760, %v369_v42  ;;  %v555_v3 = vsub.f32 %v1676_v32, %v554_v46  ;;  %v566_v5 = vand.u32 4294901760, %v1684_v47  ;;  %v550_v7 = vand.u32 4294901760, %v549_v54 }
  0x65   : > { %v1698_v11 = vand.u32 4294901760, %v368_v57  ;;  %v561_v12 = vsub.f32 %v1680_v41, %v560_v61 }
  0x66   : > { %v1704_v13 = vsub.f32 %v369_v42, %v1692_v2  ;;  %v556_v16 = vand.u32 4294901760, %v555_v3  ;;  %v567_v17 = vsub.f32 %v1684_v47, %v566_v5 }
  0x67   : > { %427 = vmatpush1.xpose.msra.mxu0 %v1670_v28  ;;  %545 = vmatpush1.xpose.msra.mxu1 %v544_v53  ;;  %v1711_v18 = vsub.f32 %v368_v57, %v1698_v11  ;;  %v562_v19 = vand.u32 4294901760, %v561_v12 }
  0x68   : > { %429 = vmatprep.subr.mxu0 %v1692_v2  ;;  %551 = vmatprep.subr.mxu1 %v550_v7  ;;  %v572_v21 = vand.u32 4294901760, %v1704_v13  ;;  %v568_v30 = vand.u32 4294901760, %v567_v17 }
  0x69   : > { %v578_v24 = vand.u32 4294901760, %v1711_v18 }
  0x6a   : > { %v573_v26 = vsub.f32 %v1704_v13, %v572_v21 }
  0x6b   : > { %431 = vmatpush1.xpose.msra.mxu0 %v1698_v11  ;;  %557 = vmatpush1.xpose.msra.mxu1 %v556_v16  ;;  %v579_v31 = vsub.f32 %v1711_v18, %v578_v24 }
  0x6c   : > { %563 = vmatprep.subr.mxu1 %v562_v19  ;;  %638 = vmatprep.subr.mxu0 %v1557_v44  ;;  %v574_v36 = vand.u32 4294901760, %v573_v26 }
  0x6d   : > { %v580_v42 = vand.u32 4294901760, %v579_v31 }
  0x6e   : > { %465 = vmatmul.mubr.f32.vlgmr.msra.gmra.mxu0 %v1389_v8 }
  0x6f   : > { %569 = vmatpush1.xpose.msra.mxu1 %v568_v30  ;;  %641 = vmatpush1.xpose.msra.mxu0 %v1567_v51 }
  0x70   : > { %575 = vmatprep.subr.mxu1 %v574_v36  ;;  %644 = vmatprep.subr.mxu0 %v1570_v52 }
  0x71   : > { %716 = vmatprep.mubr.f32.mxu0 %v1389_v8 }
  0x73   : > { %581 = vmatpush1.xpose.msra.mxu1 %v580_v42  ;;  %647 = vmatpush1.xpose.msra.mxu0 %v1579_v58 }
  0x74   : > { %650 = vmatprep.subr.mxu0 %v1584_v62  ;;  %739 = vmatprep.subr.mxu1 %v1547_v35 }
  0x76   : > { %615 = vmatmul.mubr.f32.vlgmr.msra.gmra.mxu1 %v1390_v9 }
  0x77   : > { %653 = vmatpush1.xpose.msra.mxu0 %v1607_v14  ;;  %741 = vmatpush1.xpose.msra.mxu1 %v1549_v39 }
  0x78   : > { %656 = vmatprep.subr.mxu0 %v1621_v29  ;;  %743 = vmatprep.subr.mxu1 %v1551_v40 }
  0x79   : > { %802 = vmatprep.mubr.f32.mxu1 %v1389_v8 }
  0x7b   : > { %659 = vmatpush1.xpose.msra.mxu0 %v1632_v37  ;;  %745 = vmatpush1.xpose.msra.mxu1 %v1554_v43 }
  0x7c   : > { %662 = vmatprep.subr.mxu0 %v1636_v45  ;;  %747 = vmatprep.subr.mxu1 %v1562_v49 }
  0x7f   : > { %665 = vmatpush1.xpose.msra.mxu0 %v1653_v10  ;;  %749 = vmatpush1.xpose.msra.mxu1 %v1564_v50 }
  0x80   : > { %668 = vmatprep.subr.mxu0 %v1667_v25  ;;  %751 = vmatprep.subr.mxu1 %v1576_v56 }
  0x83   : > { %671 = vmatpush1.xpose.msra.mxu0 %v1676_v32  ;;  %753 = vmatpush1.xpose.msra.mxu1 %v1589_v0 }
  0x84   : > { %674 = vmatprep.subr.mxu0 %v1680_v41  ;;  %755 = vmatprep.subr.mxu1 %v1618_v27 }
  0x87   : > { %677 = vmatpush1.xpose.msra.mxu0 %v1684_v47  ;;  %757 = vmatpush1.xpose.msra.mxu1 %v1626_v33 }
  0x88   : > { %680 = vmatprep.subr.mxu0 %v1704_v13  ;;  %759 = vmatprep.subr.mxu1 %v1647_v4 }
  0x8b   : > { %683 = vmatpush1.xpose.msra.mxu0 %v1711_v18  ;;  %761 = vmatpush1.xpose.msra.mxu1 %v1657_v15 }
  0x8c   : > { %763 = vmatprep.subr.mxu1 %v1664_v22  ;;  %827 = vmatprep.subr.mxu0 %v488_v55 }
  0x8e   : > { %717 = vmatmul.mubr.f32.vlgmr.msra.gmra.mxu0 %v1389_v8 }
  0x8f   : > { %765 = vmatpush1.xpose.msra.mxu1 %v1670_v28  ;;  %831 = vmatpush1.xpose.msra.mxu0 %v494_v59 }
  0x90   : > { %767 = vmatprep.subr.mxu1 %v1692_v2  ;;  %835 = vmatprep.subr.mxu0 %v500_v60 }
  0x91   : > { %920 = vmatprep.mubr.f32.mxu0 %v1390_v9 }
  0x93   : > { %769 = vmatpush1.xpose.msra.mxu1 %v1698_v11  ;;  %839 = vmatpush1.xpose.msra.mxu0 %v506_v1 }
  0x94   : > { %843 = vmatprep.subr.mxu0 %v512_v6  ;;  %943 = vmatprep.subr.mxu1 %v1547_v35 }
  0x96   : > { %803 = vmatmul.mubr.f32.vlgmr.msra.gmra.mxu1 %v1389_v8 }
  0x97   : > { %847 = vmatpush1.xpose.msra.mxu0 %v518_v23  ;;  %945 = vmatpush1.xpose.msra.mxu1 %v1549_v39 }
  0x98   : > { %851 = vmatprep.subr.mxu0 %v524_v38  ;;  %947 = vmatprep.subr.mxu1 %v1551_v40 }
  0x99   : > { %1006 = vmatprep.mubr.f32.mxu1 %v1390_v9 }
  0x9b   : > { %855 = vmatpush1.xpose.msra.mxu0 %v530_v48  ;;  %949 = vmatpush1.xpose.msra.mxu1 %v1554_v43 }
  0x9c   : > { %859 = vmatprep.subr.mxu0 %v536_v63  ;;  %951 = vmatprep.subr.mxu1 %v1562_v49 }
  0x9f   : > { %863 = vmatpush1.xpose.msra.mxu0 %v542_v20  ;;  %953 = vmatpush1.xpose.msra.mxu1 %v1564_v50 }
  0xa0   : > { %867 = vmatprep.subr.mxu0 %v548_v34  ;;  %955 = vmatprep.subr.mxu1 %v1576_v56  ;;  %v1027_v34 = vld [vmem:[#allocation7] sm:$0x1] }
  0xa3   : > { %871 = vmatpush1.xpose.msra.mxu0 %v554_v46  ;;  %957 = vmatpush1.xpose.msra.mxu1 %v1589_v0 }
  0xa4   : > { %875 = vmatprep.subr.mxu0 %v560_v61  ;;  %959 = vmatprep.subr.mxu1 %v1618_v27  ;;  %v1021_v27 = vld [vmem:[%s295_s24] sm:$0x1] }
  0xa5   : > { %v1022_v37 = vsub.f32 1.0, %v1021_v27 }
  0xa7   : > { %879 = vmatpush1.xpose.msra.mxu0 %v566_v5  ;;  %961 = vmatpush1.xpose.msra.mxu1 %v1626_v33 }
  0xa8   : > { %883 = vmatprep.subr.mxu0 %v572_v21  ;;  %963 = vmatprep.subr.mxu1 %v1647_v4 }
  0xab   : > { %887 = vmatpush1.xpose.msra.mxu0 %v578_v24  ;;  %965 = vmatpush1.xpose.msra.mxu1 %v1657_v15 }
  0xac   : > { %967 = vmatprep.subr.mxu1 %v1664_v22 }
  0xae   : > { %921 = vmatmul.mubr.f32.vlgmr.msra.gmra.mxu0 %v1390_v9 }
  0xaf   : > { %969 = vmatpush1.xpose.msra.mxu1 %v1670_v28 }
  0xb0   : > { %971 = vmatprep.subr.mxu1 %v1692_v2 }
  0xb3   : > { %973 = vmatpush1.xpose.msra.mxu1 %v1698_v11 }
  0xb6   : > { %1007 = vmatmul.mubr.f32.vlgmr.msra.gmra.mxu1 %v1390_v9 }
 0x12e   : > { %v466_v8 = vpop.f32.mrf.mxu0 }
 0x130   : > { %v468_v35 = vpop.f32.mrf.mxu0 }
 0x136   : > { %v616_v39 = vpop.f32.mrf.mxu1 }
 0x137   : > { %v617_v52 = vadd.f32 %v616_v39, %v466_v8 }
 0x138   : > { %v618_v40 = vpop.f32.mrf.mxu1 }
 0x14e   : > { %v718_v43 = vpop.f32.mrf.mxu0 }
 0x14f   : > { %v719_v56 = vadd.f32 %v718_v43, %v617_v52 }
 0x150   : > { %v720_v44 = vpop.f32.mrf.mxu0 }
 0x156   : > { %v804_v49 = vpop.f32.mrf.mxu1 }
 0x157   : > { %v805_v58 = vadd.f32 %v804_v49, %v719_v56 }
 0x158   : > { %v806_v50 = vpop.f32.mrf.mxu1 }
 0x16e   : > { %v922_v51 = vpop.f32.mrf.mxu0 }
 0x16f   : > { %v923_v59 = vadd.f32 %v922_v51, %v805_v58 }
 0x170   : > { %v924_v55 = vpop.f32.mrf.mxu0 }
 0x176   : > { %v1008_v60 = vpop.f32.mrf.mxu1 }
 0x177   : > { %v1009_v62 = vadd.f32 %v1008_v60, %v923_v59 }
 0x178   : > { %v1010_v0 = vpop.f32.mrf.mxu1 }
 0x179   : > { %1242 = vrsqrt.f32 %v1009_v62  ;;  %vm1014_vm1 = vcmp.eq.f32.partialorder %v1009_v62, inf  ;;  %v1017_v6 = vand.u32 2147483648, %v1009_v62  ;;  %vm1016_vm2 = vcmp.eq.f32.partialorder %v1009_v62, 0.0 }
 0x17a   : > { %v1023_v45 = vmul.f32 %v1022_v37, %v1009_v62 }
 0x186   : > { %v1243_v9 = vpop.eup %1242 }
 0x187   : > { %v1013_v1 = vmul.f32 %v1243_v9, %v1009_v62 }
 0x189   : > { %v1015_v14 = vsel %vm1014_vm1, %v1009_v62, %v1013_v1 }
 0x18a   : > { %v1018_v23 = vsel %vm1016_vm2, %v1017_v6, %v1015_v14 }
 0x18b   : > { %v1019_v29 = vsub.f32 2.0, %v1018_v23 }
 0x18d   : > { %v1020_v33 = vmax.f32 %v1019_v29, 0.0 }
 0x18f   : > { %v1024_v38 = vmul.f32 %v1020_v33, %v1020_v33 }
 0x191   : > { %v1025_v48 = vmul.f32 %v1024_v38, %v1021_v27 }
 0x193   : > { %v1026_v63 = vadd.f32 %v1025_v48, %v1023_v45 }
 0x195   : > { %v1029_v4 = vsel %vm1028_vm3, %v1026_v63, 0.0 }
 0x196   : > { %1030 = vadd.xlane.f32.xlu0 %v1029_v4 }
 0x21f   : > { %v1031_v10 = vpop.xlane.xlu0 %1030 }
 0x220   : > { %v1032_v15 = vrot.slane %v1031_v10, 4 }
 0x222   : > { %v1033_v20 = vadd.f32 %v1032_v15, %v1031_v10 }
 0x224   : > { %v1034_v22 = vrot.slane %v1033_v20, 2 }
 0x226   : > { %v1035_v25 = vadd.f32 %v1034_v22, %v1033_v20 }
 0x228   : > { %v1036_v28 = vrot.slane %v1035_v25, 1 }
 0x22a   : > { %v1037_v32 = vadd.f32 %v1036_v28, %v1035_v25 }
 0x22c   : > { %1168 = vpush %v1037_v32 }
 0x25d   : > { %s1169_s10 = spop %1168 }
 0x25e   : > { %v1039_v41 = vstv %s1169_s10 }
 0x25f   : > { %v1040_v46 = vadd.f32 %v1039_v41, %v1027_v34 }
 0x261   : > { %1042 = vst.msk [vmem:[#allocation7] sm:$0x1] %vm1041_vm4, %v1040_v46 }
 0x262   : > { %1313 = shalt.err (!%p1310_p0)
}
 0x263   : > { %1175 = dma.vmem_to_hbm [thread:$0]  (%p1820_p8), %s1053_s9, 16, %s1856_s3, [#allocation4]  }
 0x264   : > { %1357 = dma.done.wait (%p1820_p8), [#allocation4], 16  }
 0x265   : > { %1359 = vsyncadd (%p1820_p8), [#allocation4], 4294967280 }
 0x266 PF: > { %s20_s17 = sadd.s32 1, %s1382_s17   ;;  %s1861_s12 = smov %s1366_s13 }
 0x267   : > { %p17_p1 = scmp.ge.s32.totalorder %s20_s17, 4   ;;  %s1862_s13 = smov %s1370_s14 }
 0x268   : > { %s1863_s14 = smov %s1468_s27  ;;  %s1864_s15 = smov %s1378_s16 }
 0x269   : > { %s1865_s16 = smov %s1867_s19  ;;  %19 = sbr.rel (!%p17_p1) target bundleno = 7 (0x7), region = 90 }
 0x26e   :  { %1065 = vsyncpa [#allocation3], 1 }
 0x26f   :  { %1067 = vsyncpa [#allocation3 + $0x1], 1 }
 0x270   :  { %1068 = vsyncpa [#allocation6], 1 }
 0x271   :  { %1070 = vsyncpa [#allocation6 + $0x1], 1 }
 0x272   :  { %1071 = vsyncpa [#allocation4], 1 }
 0x273   :  { %1073 = vsyncpa [#allocation4 + $0x1], 1 }

// kernel: tpu_custom_call.1
= control target key start
LH: loop header
LB: loop body
LE: loop exit
PB: predicated region body
PF: predicated region fallthrough
CT: control target
= control target key end

     0   :  { %8 = vsyncpa [#allocation3], 0  ;;  %s242_s0 = inlined_call_operand.vmem [shape: f32[8,32], index: 0, kind: input, shape index: {}]   ;;  %s243_s1 = inlined_call_operand.hbm [shape: f32[8,32], index: 1, kind: input, shape index: {}]   ;;  %s244_s2 = inlined_call_operand.vmem [shape: f32[1,8,1], index: 2, kind: input, shape index: {}]   ;;  %s245_s3 = inlined_call_operand.hbm [shape: f32[1,1,1], index: 3, kind: output, shape index: {}]  }
   0x1   :  { %9 = vsyncpa [#allocation4], 0  ;;  %s205_s12 = smov [#allocation2]  }
   0x2   :  { %s33_s13 = sshll.u32 %s205_s12, 4  ;;  %s34_s13 = int_to_ptr.vmem [resolvable:$true] %s33_s13 }
   0x3   :  { %s169_s14 = scalar_lea.vmem %s34_s13, 128  ;;  %p174_p1 = scmp.lt.s32.totalorder %s34_s13, %s34_s13 }
   0x4   :  { %p170_p0 = scmp.ne.s32.totalorder %s34_s13, %s169_s14  ;;  %p175_p2 = scmp.lt.s32.totalorder %s169_s14, %s169_s14 }
   0x6   :  { %p176_p3 = por %p175_p2, %p174_p1 }
   0x8   :  { %p177_p4 = pnand %p176_p3, %p170_p0 }
   0xa   :  { %180 = shalt.err (!%p177_p4)
}
   0xb   :  { %36 = dma.hbm_to_vmem [thread:$0]  %s243_s1, 128, %s34_s13, [#allocation3]  }
   0xc   :  { %201 = dma.done.wait [#allocation3], 128  }
   0xd   :  { %202 = vsyncadd [#allocation3], 4294967168  ;;  %vm83_vm0 = vcmask 0   ;;  %v206_v0 = vmov 0.0   ;;  %v85_v1 = vld [vmem:[%s242_s0] sm:$0xff]  ;;  %vm90_vm1 = vcmask 261120  }
   0xe   :  { %84 = vst.msk [vmem:[#allocation5] sm:$0x1] %vm83_vm0, %v206_v0  ;;  %v86_v2 = vld [vmem:[#allocation2] sm:$0xff]  ;;  %vm110_vm4 = vcmask 7168   ;;  %s207_s0 = smov [#allocation5]  }
   0xf   :  { %v87_v3 = vsub.f32 %v85_v1, %v86_v2  ;;  %v103_v13 = vld [vmem:[%s244_s2] sm:$0xff]  ;;  %s131_s2 = sshll.u32 %s207_s0, 4  ;;  %s132_s2 = int_to_ptr.vmem [resolvable:$true] %s131_s2 }
  0x10   :  { %v104_v16 = vsub.f32 1.0, %v103_v13  ;;  %s181_s21 = scalar_lea.vmem %s132_s2, 16  ;;  %s185_s22 = scalar_lea.vmem %s132_s2, 32 }
  0x11   :  { %v88_v4 = vadd.f32 1e-06, %v87_v3  ;;  %p182_p5 = scmp.ne.s32.totalorder %s132_s2, %s181_s21  ;;  %p186_p6 = scmp.lt.s32.totalorder %s132_s2, %s132_s2 }
  0x12   :  { %p187_p7 = scmp.lt.s32.totalorder %s185_s22, %s181_s21 }
  0x13   :  { %v89_v5 = vmul.f32 %v88_v4, %v88_v4 }
  0x14   :  { %p188_p8 = por %p187_p7, %p186_p6 }
  0x15   :  { %v91_v6 = vsel %vm90_vm1, %v89_v5, 0.0  ;;  %v109_v29 = vld [vmem:[#allocation5] sm:$0x1] }
  0x16   :  { %92 = vadd.xlane.f32.xlu0 %v91_v6  ;;  %p189_p9 = pnand %p188_p8, %p182_p5 }
  0x9f   :  { %v93_v7 = vpop.xlane.xlu0 %92 }
  0xa0   :  { %159 = vrsqrt.f32 %v93_v7  ;;  %vm96_vm2 = vcmp.eq.f32.partialorder %v93_v7, inf  ;;  %v99_v10 = vand.u32 2147483648, %v93_v7  ;;  %vm98_vm3 = vcmp.eq.f32.partialorder %v93_v7, 0.0 }
  0xa1   :  { %v105_v18 = vmul.f32 %v104_v16, %v93_v7 }
  0xad   :  { %v160_v8 = vpop.eup %159 }
  0xae   :  { %v95_v9 = vmul.f32 %v160_v8, %v93_v7 }
  0xb0   :  { %v97_v11 = vsel %vm96_vm2, %v93_v7, %v95_v9 }
  0xb1   :  { %v100_v12 = vsel %vm98_vm3, %v99_v10, %v97_v11 }
  0xb2   :  { %v101_v14 = vsub.f32 2.0, %v100_v12 }
  0xb4   :  { %v102_v15 = vmax.f32 %v101_v14, 0.0 }
  0xb6   :  { %v106_v17 = vmul.f32 %v102_v15, %v102_v15 }
  0xb8   :  { %v107_v19 = vmul.f32 %v106_v17, %v103_v13 }
  0xba   :  { %v108_v20 = vadd.f32 %v107_v19, %v105_v18 }
  0xbc   :  { %v111_v21 = vsel %vm110_vm4, %v108_v20, 0.0 }
  0xbd   :  { %112 = vadd.xlane.f32.xlu0 %v111_v21 }
 0x146   :  { %v113_v22 = vpop.xlane.xlu0 %112 }
 0x147   :  { %v114_v23 = vrot.slane %v113_v22, 4 }
 0x149   :  { %v115_v24 = vadd.f32 %v114_v23, %v113_v22 }
 0x14b   :  { %v116_v25 = vrot.slane %v115_v24, 2 }
 0x14d   :  { %v117_v26 = vadd.f32 %v116_v25, %v115_v24 }
 0x14f   :  { %v118_v27 = vrot.slane %v117_v26, 1 }
 0x151   :  { %v119_v28 = vadd.f32 %v118_v27, %v117_v26 }
 0x153   :  { %154 = vpush %v119_v28 }
 0x184   :  { %s155_s20 = spop %154 }
 0x185   :  { %v121_v30 = vstv %s155_s20 }
 0x186   :  { %v122_v31 = vadd.f32 %v121_v30, %v109_v29 }
 0x188   :  { %124 = vst.msk [vmem:[#allocation5] sm:$0x1] %vm83_vm0, %v122_v31 }
 0x189   :  { %192 = shalt.err (!%p189_p9)
}
 0x18a   :  { %134 = dma.vmem_to_hbm [thread:$0]  %s132_s2, 16, %s245_s3, [#allocation4]  }
 0x18b   :  { %203 = dma.done.wait [#allocation4], 16  }
 0x18c   :  { %204 = vsyncadd [#allocation4], 4294967280 }
 0x18d   :  { %138 = vsyncpa [#allocation3], 1 }
 0x18e   :  { %139 = vsyncpa [#allocation4], 1 }

</bundles_post_ra>
